<compile_context>
chip_gen: v7x
topology: tpu7x:2x2x1
jax: 0.10.0
libtpu: 0.0.40
codegen_flags: <defaults>
</compile_context>

<pallas_src>
import math

import numpy as np
import jax
import jax.numpy as jnp
from jax.experimental import pallas as pl
from jax.experimental.pallas import tpu as pltpu

L_MAX = 8
N_COEFFS = int(0.5 * (L_MAX + 1) * (L_MAX + 2))   # 45
N_DEG = L_MAX // 2 + 1                            # 5 zonal taps (l = 0, 2, 4, 6, 8)


def _make_ls() -> np.ndarray:
    ls = np.zeros(N_COEFFS, dtype=np.int32)
    for l in range(0, L_MAX + 1, 2):
        for m in range(-l, l + 1):
            ls[int(0.5 * l * (l + 1) + m)] = l
    return ls


def sphconv_kernel(x_ref, sel_ref, w_ref, o_ref):
    """One (batch-tile, c_out-tile) grid step.

    x_ref  : (tb, K_pad, c_in)   channels-last activation tile
    sel_ref: (K_pad, n_deg)      one-hot degree selector; all-zero rows for K padding
    w_ref  : (n_deg*c_in, tco)   coef-folded weights, c_out tile on the lane axis
    o_ref  : (tb, K_pad, tco)    lane-dense output tile
    """
    tb, kp, c_in = x_ref.shape
    n_deg = sel_ref.shape[1]
    tco = w_ref.shape[1]

    x = x_ref[...]                                     # (tb, kp, c_in)
    sel = sel_ref[...]                                 # (kp, n_deg)

    # Masked degree expansion along the lane axis (VPU; same multiply count as the
    # old per-degree masking, but it now feeds a single deep-contraction matmul).
    parts = [x * sel[:, d:d + 1][None] for d in range(n_deg)]
    lhs = jnp.concatenate(parts, axis=-1)              # (tb, kp, n_deg*c_in)
    lhs = lhs.reshape(tb * kp, n_deg * c_in)           # free merge: kp % 8 == 0

    # ONE MXU matmul per grid step: M = tb*K_pad, contraction = n_deg*c_in.
    acc = jnp.dot(lhs, w_ref[...], preferred_element_type=jnp.float32)
    o_ref[...] = acc.reshape(tb, kp, tco).astype(o_ref.dtype)


def sph_conv(x, weights, ls, *, tb=None, tco=None, compute_dtype=None):
    """x: (B, c_in, n_coeffs); weights: (c_out, c_in, L_MAX//2 + 1).

    Returns (B, c_out, n_coeffs), matching the PyTorch module's forward.
    tb / tco can be swept for large models; compute_dtype=jnp.bfloat16 for speed.
    """
    B, c_in, K = x.shape
    c_out, c_in_w, n_deg = weights.shape
    assert c_in_w == c_in

    LANE, SUB = 128, 8
    K_pad = ((K + SUB - 1) // SUB) * SUB                 # 45 -> 48
    c_out_p = ((c_out + LANE - 1) // LANE) * LANE
    ndc = n_deg * c_in

    dtype = jnp.dtype(compute_dtype) if compute_dtype is not None else jnp.dtype(x.dtype)
    bpe = dtype.itemsize

    # ---- tile selection ------------------------------------------------------
    if tco is None:   # largest 128-multiple tile (<= 512) dividing the padded c_out
        tco = next(t for t in (512, 384, 256, 128) if c_out_p % t == 0)
    assert tco % LANE == 0 and c_out_p % tco == 0

    if tb is None:    # fill MXU rows: aim for tb*K_pad >= ~256
        tb = next((c for c in (8, 4, 2) if B % c == 0), 1)
    assert B % tb == 0

    # Megacore (v7x, 2 TCs): only the TOTAL parallel grid extent must be >= 2.
    # If both axes collapse to one step, split c_out first (cheap), batch last.
    if (B // tb) * (c_out_p // tco) < 2:
        if tco % 256 == 0:
            tco //= 2
        elif tb >= 2:
            tb //= 2

    # ---- VMEM budget (requirement-driven, generation-aware) -------------------
    try:
        vmem_cap = int(getattr(pltpu.get_tpu_info(), "vmem_capacity_bytes", 64 << 20))
    except Exception:
        vmem_cap = 64 << 20                               # conservative: v7x per-core VMEM

    def _vmem_need(tb_, tco_):
        blocks = (2 * tb_ * K_pad * c_in                  # x tile, double-buffered
                  + 2 * ndc * tco_                        # weight slab, double-buffered
                  + 2 * tb_ * K_pad * tco_                # out tile, double-buffered
                  + 2 * K_pad * n_deg) * bpe              # selector
        scratch = tb_ * K_pad * ndc * bpe + tb_ * K_pad * tco_ * 4   # lhs + f32 acc
        return blocks + scratch

    # Shrink the tile if the working set would blow the budget (matters on v7x: 64 MiB).
    while _vmem_need(tb, tco) > int(0.7 * vmem_cap):
        if tco > 128 and tco % 256 == 0:
            tco //= 2
        elif tb > 1:
            tb //= 2
        else:
            break

    need = _vmem_need(tb, tco)
    vmem_limit = max(int(1.25 * need) + (4 << 20), 16 << 20)   # headroom over the need
    vmem_limit = min(vmem_limit, int(0.75 * vmem_cap))         # ~48 MiB v7x / ~96 MiB v5e,v6e
    vmem_limit = max(vmem_limit, need + (2 << 20))             # never clamp below the need

    n_b, n_co = B // tb, c_out_p // tco

    # ---- parameter / layout glue (tiny, plain JAX) -----------------------------
    # coef depends only on d = l//2 (l = 2d): sqrt(pi / (4d + 1)); fold it exactly
    # into the compressed 5-tap weights (never expand to (c_out, c_in, 45)).
    d_ids = jnp.arange(n_deg, dtype=jnp.float32)
    coef_d = jnp.sqrt(math.pi / (4.0 * d_ids + 1.0))
    w_s = weights.astype(jnp.float32) * coef_d[None, None, :]         # (c_out, c_in, n_deg)
    w2 = jnp.transpose(w_s, (2, 1, 0)).reshape(ndc, c_out)            # [(d,i), co]
    w2 = jnp.pad(w2, ((0, 0), (0, c_out_p - c_out))).astype(dtype)    # lane-pad c_out

    # One-hot degree selector per SH coefficient; padded K rows are all-zero so they
    # contribute nothing (their output rows are sliced away below).
    d_of_k = jnp.asarray(ls).astype(jnp.int32) // 2
    sel = d_of_k[:, None] == jnp.arange(n_deg, dtype=jnp.int32)[None, :]
    sel = jnp.pad(sel, ((0, K_pad - K), (0, 0))).astype(dtype)        # (K_pad, n_deg)

    # Channels-last + K padded to a sublane multiple: ONE fused XLA copy over x.
    # TODO(synk): with a channels-last producer (or an in-kernel XLU transpose of the
    # native (tb, c_in, K) tile) this extra HBM pass over x disappears entirely.
    xt = jnp.pad(jnp.transpose(x, (0, 2, 1)),
                 ((0, 0), (0, K_pad - K), (0, 0))).astype(dtype)      # (B, K_pad, c_in)

    out = pl.pallas_call(
        sphconv_kernel,
        out_shape=jax.ShapeDtypeStruct((B, K_pad, c_out_p), dtype),
        grid=(n_b, n_co),                      # batch OUTER, c_out inner: x streams once
        in_specs=[
            pl.BlockSpec((tb, K_pad, c_in), lambda b, co: (b, 0, 0)),
            pl.BlockSpec((K_pad, n_deg), lambda b, co: (0, 0)),
            pl.BlockSpec((ndc, tco), lambda b, co: (0, co)),
            # TODO(synk): when n_co == 1 the weight slab could be single-buffered
            # (pipeline_mode=pl.Buffered(1)) to halve its VMEM footprint on v7x.
        ],
        out_specs=pl.BlockSpec((tb, K_pad, tco), lambda b, co: (b, 0, co)),
        compiler_params=pltpu.CompilerParams(
            dimension_semantics=("parallel", "parallel"),
            vmem_limit_bytes=vmem_limit,
        ),
    )(xt, sel, w2)

    # Back to the module's (B, c_out, K) layout (layout plumbing only).
    return jnp.transpose(out[:, :K, :c_out], (0, 2, 1)).astype(x.dtype)


if __name__ == "__main__":
    B, C_IN, C_OUT = 2, 4, 16

    ls = jnp.asarray(_make_ls())

    key = jax.random.PRNGKey(0)
    kx, kw = jax.random.split(key)
    x = jax.random.normal(kx, (B, C_IN, N_COEFFS), dtype=jnp.float32)
    # torch.nn.init.uniform_ -> U[0, 1)
    weights = jax.random.uniform(
        kw, (C_OUT, C_IN, L_MAX // 2 + 1), dtype=jnp.float32
    )

    out = jax.block_until_ready(sph_conv(x, weights, ls))

    # Pure-JAX reference replicating the PyTorch forward exactly.
    coef = jnp.sqrt(math.pi / (2.0 * ls.astype(jnp.float32) + 1.0))
    weights_exp = weights[:, :, (ls // 2)]                                # (c_out, c_in, K)
    ref = jnp.sum(
        coef[None, None, None, :] * weights_exp[None] * x[:, None], axis=2
    )                                                                     # (B, c_out, K)

    assert out.shape == (B, C_OUT, N_COEFFS)
    np.testing.assert_allclose(np.asarray(out), np.asarray(ref), rtol=1e-5, atol=1e-5)
    print("KERNEL_OK")
</pallas_src>

<mosaic_0001>
module attributes {stable_mosaic.version = 11 : i64} {
  func.func @sphconv_kernel(%arg0: i32, %arg1: i32, %arg2: memref<1x48x4xf32, #tpu.memory_space<vmem>>, %arg3: memref<48x5xf32, #tpu.memory_space<vmem>>, %arg4: memref<20x128xf32, #tpu.memory_space<vmem>>, %arg5: memref<1x48x128xf32, #tpu.memory_space<vmem>>) attributes {dimension_semantics = [#tpu.dimension_semantics<parallel>, #tpu.dimension_semantics<parallel>], iteration_bounds = array<i64: 2, 1>, scalar_prefetch = 0 : i64, scratch_operands = 0 : i64, tpu.core_type = #tpu.core_type<tc>, window_params = [{transform_indices = @transform_0, window_bounds = array<i64: 1, 48, 4>}, {pipeline_mode = #tpu.pipeline_mode<synchronous>, transform_indices = @transform_1, window_bounds = array<i64: 48, 5>}, {transform_indices = @transform_2, window_bounds = array<i64: 20, 128>}, {transform_indices = @transform_3, window_bounds = array<i64: 1, 48, 128>}]} {
    %c0 = arith.constant 0 : index
    %c0_0 = arith.constant 0 : index
    %c0_1 = arith.constant 0 : index
    %0 = vector.load %arg2[%c0, %c0_0, %c0_1] : memref<1x48x4xf32, #tpu.memory_space<vmem>>, vector<1x48x4xf32>
    %c0_2 = arith.constant 0 : index
    %c0_3 = arith.constant 0 : index
    %1 = vector.load %arg3[%c0_2, %c0_3] : memref<48x5xf32, #tpu.memory_space<vmem>>, vector<48x5xf32>
    %2 = vector.extract_strided_slice %1 {offsets = [0, 0], sizes = [48, 1], strides = [1, 1]} : vector<48x5xf32> to vector<48x1xf32>
    %3 = vector.shape_cast %2 : vector<48x1xf32> to vector<1x48x1xf32>
    %4 = vector.broadcast %3 : vector<1x48x1xf32> to vector<1x48x4xf32>
    %5 = arith.mulf %0, %4 : vector<1x48x4xf32>
    %6 = vector.extract_strided_slice %1 {offsets = [0, 1], sizes = [48, 1], strides = [1, 1]} : vector<48x5xf32> to vector<48x1xf32>
    %7 = vector.shape_cast %6 : vector<48x1xf32> to vector<1x48x1xf32>
    %8 = vector.broadcast %7 : vector<1x48x1xf32> to vector<1x48x4xf32>
    %9 = arith.mulf %0, %8 : vector<1x48x4xf32>
    %10 = vector.extract_strided_slice %1 {offsets = [0, 2], sizes = [48, 1], strides = [1, 1]} : vector<48x5xf32> to vector<48x1xf32>
    %11 = vector.shape_cast %10 : vector<48x1xf32> to vector<1x48x1xf32>
    %12 = vector.broadcast %11 : vector<1x48x1xf32> to vector<1x48x4xf32>
    %13 = arith.mulf %0, %12 : vector<1x48x4xf32>
    %14 = vector.extract_strided_slice %1 {offsets = [0, 3], sizes = [48, 1], strides = [1, 1]} : vector<48x5xf32> to vector<48x1xf32>
    %15 = vector.shape_cast %14 : vector<48x1xf32> to vector<1x48x1xf32>
    %16 = vector.broadcast %15 : vector<1x48x1xf32> to vector<1x48x4xf32>
    %17 = arith.mulf %0, %16 : vector<1x48x4xf32>
    %18 = vector.extract_strided_slice %1 {offsets = [0, 4], sizes = [48, 1], strides = [1, 1]} : vector<48x5xf32> to vector<48x1xf32>
    %19 = vector.shape_cast %18 : vector<48x1xf32> to vector<1x48x1xf32>
    %20 = vector.broadcast %19 : vector<1x48x1xf32> to vector<1x48x4xf32>
    %21 = arith.mulf %0, %20 : vector<1x48x4xf32>
    %22 = tpu.concatenate %5, %9, %13, %17, %21 in 2 : vector<1x48x4xf32>, vector<1x48x4xf32>, vector<1x48x4xf32>, vector<1x48x4xf32>, vector<1x48x4xf32> -> vector<1x48x20xf32>
    %23 = vector.shape_cast %22 : vector<1x48x20xf32> to vector<48x20xf32>
    %c0_4 = arith.constant 0 : index
    %c0_5 = arith.constant 0 : index
    %24 = vector.load %arg4[%c0_4, %c0_5] : memref<20x128xf32, #tpu.memory_space<vmem>>, vector<20x128xf32>
    %cst = arith.constant dense<0.000000e+00> : vector<48x128xf32>
    %25 = tpu.matmul %23, %24, %cst {dimension_numbers = #tpu.dot_dimension_numbers<[1], [0], [0], [1], [0, 0, 1, 1], [], []>} : vector<48x20xf32>, vector<20x128xf32>, vector<48x128xf32> -> vector<48x128xf32>
    %26 = vector.shape_cast %25 : vector<48x128xf32> to vector<1x48x128xf32>
    %c0_6 = arith.constant 0 : index
    %c0_7 = arith.constant 0 : index
    %c0_8 = arith.constant 0 : index
    %27 = vector.load %arg5[%c0_6, %c0_7, %c0_8] : memref<1x48x128xf32, #tpu.memory_space<vmem>>, vector<1x48x128xf32>
    tpu.vector_store %arg5[%c0_6, %c0_7, %c0_8], %26 {strides = array<i32>} : memref<1x48x128xf32, #tpu.memory_space<vmem>>, vector<1x48x128xf32>,
    return
  }
  func.func @transform_0(%arg0: i32, %arg1: i32) -> (i32, i32, i32) {
    %c0_i32 = arith.constant 0 : i32
    %c0_i32_0 = arith.constant 0 : i32
    %c0_i32_1 = arith.constant 0 : i32
    return %arg0, %c0_i32, %c0_i32_0 : i32, i32, i32
  }
  func.func @transform_1(%arg0: i32, %arg1: i32) -> (i32, i32) {
    %c0_i32 = arith.constant 0 : i32
    %c0_i32_0 = arith.constant 0 : i32
    %c0_i32_1 = arith.constant 0 : i32
    return %c0_i32, %c0_i32_0 : i32, i32
  }
  func.func @transform_2(%arg0: i32, %arg1: i32) -> (i32, i32) {
    %c0_i32 = arith.constant 0 : i32
    %c0_i32_0 = arith.constant 0 : i32
    return %c0_i32, %arg1 : i32, i32
  }
  func.func @transform_3(%arg0: i32, %arg1: i32) -> (i32, i32, i32) {
    %c0_i32 = arith.constant 0 : i32
    %c0_i32_0 = arith.constant 0 : i32
    return %arg0, %c0_i32, %arg1 : i32, i32, i32
  }
}

</mosaic_0001>

<bundles_post_ra>
// kernel: tpu_custom_call.1
= control target key start
LH: loop header
LB: loop body
LE: loop exit
PB: predicated region body
PF: predicated region fallthrough
CT: control target
= control target key end

     0   :  { %8 = vsyncpa [#allocation3], 0  ;;  %s1212_s0 = inlined_call_operand.vmem [shape: f32[2,48,4], index: 0, kind: input, shape index: {}]   ;;  %s1213_s1 = inlined_call_operand.vmem [shape: f32[48,5], index: 1, kind: input, shape index: {}]   ;;  %s1214_s2 = inlined_call_operand.vmem [shape: f32[20,128], index: 2, kind: input, shape index: {}]   ;;  %s1215_s3 = inlined_call_operand.hbm [shape: f32[2,48,128], index: 3, kind: output, shape index: {}]  }
   0x1   :  { %10 = vsyncpa [#allocation3 + $0x1], 0  ;;  %s965_s12 = smov 0   ;;  %s967_s13 = smov 0  }
   0x2   :  { %s969_s14 = smov 0   ;;  %s971_s15 = smov 0  }
   0x3   :  { %s973_s16 = smov 0   ;;  %s975_s17 = smov 0  }
   0x4 LB: > { %s721_s18 = sadd.s32 4294967295, %s932_s17   ;;  %s722_s19 = sadd.s32 4294967294, %s932_s17   ;;  %s932_s17 = sphi %s975_s17, %s16_s17   ;;  %s928_s16 = sphi %s973_s16, %s1222_s16   ;;  %s924_s15 = sphi %s971_s15, %s1221_s15   ;;  %s920_s14 = sphi %s969_s14, %s1220_s14   ;;  %s916_s13 = sphi %s967_s13, %s1219_s13   ;;  %s912_s12 = sphi %s965_s12, %s1218_s12  }
   0x5   : > { %s28_s20 = sadd.s32 1, %s928_s16  ;;  %s110_s21 = sadd.s32 1, %s920_s14 }
   0x6   : > { %p30_p0 = scmp.ge.s32.totalorder %s28_s20, 2  ;;  %p120_p1 = scmp.ne.s32.totalorder %s920_s14, %s916_s13 }
   0x7   : > { %p121_p2 = scmp.eq.s32.totalorder %s721_s18, 1  ;;  %p126_p3 = scmp.ne.s32.totalorder %s916_s13, %s912_s12 }
   0x8   : > { %s1224_s20 = smov (%p30_p0, %s28_s20), 0  ;;  %p127_p5 = scmp.eq.s32.totalorder %s722_s19, 1 }
   0x9   : > { %p1005_p4 = por %p121_p2, %p120_p1  ;;  %s105_s23 = ssub.s32 %s928_s16, %s1224_s20 }
   0xa   : > { %p726_p6 = scmp.ge.s32.totalorder %s932_s17, 1  ;;  %p108_p7 = scmp.eq.s32.totalorder %s105_s23, 0 }
   0xb   : > { %p1012_p8 = por %p127_p5, %p126_p3  ;;  %p163_p9 = scmp.lt.s32.totalorder %s932_s17, 3 }
   0xc   : > { %s1018_s25 = scalar_select %p108_p7, %s920_s14, %s110_s21  }
   0xd   : > { %p164_p10 = pnand %p726_p6, %p163_p9 }
   0xe   : > { %v208_v0 = vld [vmem:[%s1213_s1 + $0x10] sm:$0xff] (!%p164_p10)  ;;  %v934_v1 = vmov (!%p164_p10), 2   ;;  %v935_v2 = vmov (!%p164_p10), 1   ;;  %v209_v3 = vld [vmem:[%s1213_s1 + $0x18] sm:$0xff] (!%p164_p10)  ;;  %v206_v4 = vld [vmem:[%s1213_s1] sm:$0xff] (!%p164_p10)  ;;  %v936_v5 = vmov (!%p164_p10), 3  }
   0xf   : > { %167 = sbr.rel (%p164_p10) target bundleno = 552 (0x228), region = 32  ;;  %839 = vset.pattern.permute.xlu1 (!%p164_p10), %v934_v1  ;;  %838 = vset.pattern.permute.xlu0 (!%p164_p10), %v935_v2  ;;  %v207_v6 = vld [vmem:[%s1213_s1 + $0x8] sm:$0xff] (!%p164_p10)  ;;  %v937_v7 = vmov (!%p164_p10), 4   ;;  %v210_v8 = vld [vmem:[%s1213_s1 + $0x20] sm:$0xff] (!%p164_p10)  ;;  %v938_v10 = vmov (!%p164_p10), 0   ;;  %p191_p11 = scmp.lt.s32.totalorder (!%p164_p10), %s924_s15, 1 }
  0x10   : > { %287 = vperm.xlu1 (!%p164_p10), %839, %v208_v0   ;;  %257 = vperm.xlu0 (!%p164_p10), %838, %v208_v0   ;;  %v211_v9 = vld [vmem:[%s1213_s1 + $0x28] sm:$0xff] (!%p164_p10)  ;;  %s939_s26 = smov (!%p164_p10), 4   ;;  %s940_s27 = smov (!%p164_p10), 8   ;;  %v492_v25 = vld [vmem:[%s1214_s2] sm:$0xff] (!%p164_p10)  ;;  %v494_v33 = vld [vmem:[%s1214_s2 + $0x10] sm:$0xf] (!%p164_p10) }
  0x11   : > { %v493_v26 = vld [vmem:[%s1214_s2 + $0x8] sm:$0xff] (!%p164_p10)  ;;  %s941_s5 = smov (!%p164_p10), 12   ;;  %vm514_vm0 = vcmask (!%p164_p10), 1043456   ;;  %s942_s8 = smov (!%p164_p10), 16   ;;  %vm464_vm1 = vcmask (!%p164_p10), 31744   ;;  %vm471_vm2 = vcmask (!%p164_p10), 64512  }
  0x12   : > { %v762_v29 = vpack.c.bf16 (!%p164_p10), %v493_v26, %v492_v25  ;;  %vm478_vm3 = vcmask (!%p164_p10), 97280   ;;  %vm485_vm4 = vcmask (!%p164_p10), 130048   ;;  %vm495_vm5 = vcmask (!%p164_p10), 162816   ;;  %s188_s9 = sand.u32 (!%p164_p10), 1, %s916_s13   ;;  %s772_s19 = smul.u32 (!%p164_p10), 768, %s924_s15 }
  0x13   : > { %s770_s10 = smul.u32 (!%p164_p10), 48, %s188_s9  ;;  %s1165_s28 = scalar_lea.sflag (!%p164_p10), [#allocation3], %s188_s9 }
  0x14   : > { %291 = vperm.xlu1 (!%p164_p10), %839, %v209_v3   ;;  %261 = vperm.xlu0 (!%p164_p10), %838, %v209_v3   ;;  %s943_s29 = smov (!%p164_p10), [#allocation2]  }
  0x15   : > { %766 = vmatprep.subr.bf16.mxu1 (!%p164_p10), %v762_v29  ;;  %763 = vmatprep.subr.bf16.mxu0 (!%p164_p10), %v762_v29  ;;  %s858_s30 = sshll.u32 (!%p164_p10), %s943_s29, 4  ;;  %s859_s30 = int_to_ptr.vmem [resolvable:$false] %s858_s30 }
  0x16   : > { %s192_s11 = scalar_select %p191_p11, %s924_s15, 1  ;;  %768 = vmatpush3.bf16.msra.mxu1 %v762_v29  ;;  %765 = vmatpush3.bf16.msra.mxu0 %v762_v29 }
  0x17   : > { %767 = vmatprep.subr.msk.mxu1 %vm514_vm0, %v494_v33  ;;  %751 = vmatprep.subr.msk.mxu0 %vm514_vm0, %v494_v33  ;;  %s860_s4 = scalar_lea.vmem %s859_s30, 1536 }
  0x18   : > { %840 = vset.pattern.permute.xlu1 %v936_v5  ;;  %249 = vperm.xlu0 %838, %v206_v4   ;;  %s771_s18 = smul.u32 48, %s192_s11  ;;  %s190_s11 = scalar_lea.vmem [#allocation2], %s770_s10 }
  0x19   : > { %321 = vperm.xlu1 %840, %v209_v3  }
  0x1a   : > { %s1043_s23 = scalar_lea.vmem %s1212_s0, %s771_s18  ;;  %769 = vmatpush3.msk.msra.mxu1 %vm514_vm0, %v494_v33  ;;  %752 = vmatpush3.msk.msra.mxu0 %vm514_vm0, %v494_v33  ;;  %s634_s18 = sshll.u32 %s190_s11, 4  ;;  %s1158_s18 = int_to_ptr.vmem [resolvable:$true] %s634_s18 }
  0x1b   : > { %v1046_v11 = vld [vmem:[%s1043_s23 + $0x10] sm:$0xff]  ;;  %v1050_v15 = vld [vmem:[%s1043_s23 + $0x18] sm:$0xff]  ;;  %v1067_v27 = vld [vmem:[%s1043_s23] sm:$0xff]  ;;  %s854_s15 = scalar_lea.vmem %s1158_s18, 768  ;;  %p861_p1 = scmp.lt.s32.totalorder %s1158_s18, %s859_s30 }
  0x1c   : > { %253 = vperm.xlu0 %838, %v207_v6   ;;  %v1079_v39 = vld [vmem:[%s1043_s23 + $0x28] sm:$0xff]  ;;  %v1085_v43 = vld [vmem:[%s1043_s23 + $0x20] sm:$0xff]  ;;  %p855_p12 = scmp.ne.s32.totalorder %s1158_s18, %s854_s15  ;;  %p862_p2 = scmp.lt.s32.totalorder %s860_s4, %s854_s15 }
  0x1d   : > { %841 = vset.pattern.permute.xlu1 %v937_v7  ;;  %v1092_v47 = vld [vmem:[%s1043_s23 + $0x8] sm:$0xff] }
  0x1e   : > { %347 = vperm.xlu1 %841, %v208_v0   ;;  %p856_p13 = pnand %p855_p12, %p1005_p4  ;;  %p863_p3 = por %p862_p2, %p861_p1 }
  0x20   : > { %845 = vset.pattern.permute.xlu0 %v934_v1  ;;  %p857_p0 = pneg %p856_p13 }
  0x21   : > { %279 = vperm.xlu0 %845, %v206_v4  }
  0x22   : > { %842 = vset.pattern.permute.xlu1 %v935_v2  ;;  %p864_p5 = pnand %p863_p3, %p857_p0 }
  0x23   : > { %265 = vperm.xlu1 %842, %v210_v8  }
  0x25   : > { %299 = vperm.xlu0 %845, %v211_v9  }
  0x27   : > { %843 = vset.pattern.permute.xlu1 %v937_v7 }
  0x28   : > { %351 = vperm.xlu1 %843, %v209_v3  }
  0x29   : > { %847 = vset.pattern.permute.xlu0 %v936_v5 }
  0x2a   : > { %317 = vperm.xlu0 %847, %v208_v0  }
  0x2c   : > { %844 = vset.pattern.permute.xlu1 %v935_v2 }
  0x2d   : > { %269 = vperm.xlu1 %844, %v211_v9  }
  0x2e   : > { %325 = vperm.xlu0 %847, %v210_v8  }
  0x31   : > { %846 = vset.pattern.permute.xlu1 %v934_v1 }
  0x32   : > { %295 = vperm.xlu1 %846, %v210_v8   ;;  %849 = vset.pattern.permute.xlu0 %v937_v7 }
  0x33   : > { %339 = vperm.xlu0 %849, %v206_v4  }
  0x36   : > { %283 = vperm.xlu1 %846, %v207_v6  }
  0x37   : > { %359 = vperm.xlu0 %849, %v211_v9  }
  0x3a   : > { %848 = vset.pattern.permute.xlu1 %v936_v5 }
  0x3b   : > { %309 = vperm.xlu1 %848, %v206_v4   ;;  %852 = vset.pattern.permute.xlu0 %v938_v10 }
  0x3c   : > { %229 = vperm.xlu0 %852, %v209_v3  }
  0x3f   : > { %313 = vperm.xlu1 %848, %v207_v6  }
  0x40   : > { %219 = vperm.xlu0 %852, %v207_v6  }
  0x43   : > { %329 = vperm.xlu1 %848, %v211_v9  }
  0x44   : > { %853 = vset.pattern.permute.xlu0 %v937_v7 }
  0x47   : > { %850 = vset.pattern.permute.xlu1 %v937_v7 }
  0x48   : > { %355 = vperm.xlu1 %850, %v210_v8  }
  0x4c   : > { %343 = vperm.xlu1 %850, %v207_v6  }
  0x50   : > { %851 = vset.pattern.permute.xlu1 %v938_v10 }
  0x51   : > { %224 = vperm.xlu1 %851, %v208_v0  }
  0x55   : > { %214 = vperm.xlu1 %851, %v206_v4  }
  0x59   : > { %234 = vperm.xlu1 %851, %v210_v8  }
  0x5d   : > { %239 = vperm.xlu1 %851, %v211_v9  }
  0x8f   : > { %v288_v12 = vpop.permute.xlu1 %287  ;;  %v258_v13 = vpop.permute.xlu0 %257 }
  0x90   : > { %v274_v14 = vmul.f32 %v258_v13, %v1046_v11  ;;  %v304_v17 = vmul.f32 %v288_v12, %v1046_v11 }
  0x92   : > { %378 = vrot.lane.b32.xlu0 %v274_v14, %s939_s26 }
  0x93   : > { %v262_v16 = vpop.permute.xlu0 %261  ;;  %v292_v18 = vpop.permute.xlu1 %291 }
  0x94   : > { %v275_v19 = vmul.f32 %v262_v16, %v1050_v15  ;;  %v305_v21 = vmul.f32 %v292_v18, %v1050_v15 }
  0x96   : > { %380 = vrot.lane.b32.xlu1 %v275_v19, %s939_s26  ;;  %402 = vrot.lane.b32.xlu0 %v304_v17, %s940_s27 }
  0x97   : > { %v250_v20 = vpop.permute.xlu0 %249 }
  0x98   : > { %v322_v22 = vpop.permute.xlu1 %321  ;;  %v272_v30 = vmul.f32 %v250_v20, %v1067_v27 }
  0x99   : > { %v335_v23 = vmul.f32 %v322_v22, %v1050_v15 }
  0x9a   : > { %404 = vrot.lane.b32.xlu1 %v305_v21, %s940_s27 }
  0x9b   : > { %v254_v24 = vpop.permute.xlu0 %253 }
  0x9c   : > { %v273_v49 = vmul.f32 %v254_v24, %v1092_v47 }
  0x9d   : > { %v348_v28 = vpop.permute.xlu1 %347 }
  0x9e   : > { %428 = vrot.lane.b32.xlu1 %v335_v23, %s941_s5  ;;  %v364_v42 = vmul.f32 %v348_v28, %v1046_v11 }
  0xa0   : > { %v280_v31 = vpop.permute.xlu0 %279 }
  0xa1   : > { %v302_v52 = vmul.f32 %v280_v31, %v1067_v27 }
  0xa2   : > { %374 = vrot.lane.b32.xlu1 %v272_v30, %s939_s26  ;;  %v266_v32 = vpop.permute.xlu1 %265 }
  0xa3   : > { %v276_v45 = vmul.f32 %v266_v32, %v1085_v43 }
  0xa4   : > { %v300_v34 = vpop.permute.xlu0 %299 }
  0xa5   : > { %v307_v50 = vmul.f32 %v300_v34, %v1079_v39 }
  0xa7   : > { %v352_v35 = vpop.permute.xlu1 %351 }
  0xa8   : > { %v365_v36 = vmul.f32 %v352_v35, %v1050_v15 }
  0xa9   : > { %v318_v37 = vpop.permute.xlu0 %317 }
  0xaa   : > { %v334_v38 = vmul.f32 %v318_v37, %v1046_v11  ;;  %452 = vrot.lane.b32.xlu1 %v365_v36, %s942_s8 }
  0xac   : > { %v270_v40 = vpop.permute.xlu1 %269  ;;  %426 = vrot.lane.b32.xlu0 %v334_v38, %s941_s5 }
  0xad   : > { %v277_v41 = vmul.f32 %v270_v40, %v1079_v39  ;;  %v326_v51 = vpop.permute.xlu0 %325 }
  0xae   : > { %v336_v53 = vmul.f32 %v326_v51, %v1085_v43 }
  0xaf   : > { %384 = vrot.lane.b32.xlu1 %v277_v41, %s939_s26 }
  0xb0   : > { %450 = vrot.lane.b32.xlu0 %v364_v42, %s942_s8 }
  0xb1   : > { %v296_v44 = vpop.permute.xlu1 %295 }
  0xb2   : > { %v306_v46 = vmul.f32 %v296_v44, %v1085_v43  ;;  %v340_v60 = vpop.permute.xlu0 %339 }
  0xb3   : > { %v362_v63 = vmul.f32 %v340_v60, %v1067_v27 }
  0xb4   : > { %382 = vrot.lane.b32.xlu0 %v276_v45, %s939_s26  ;;  %406 = vrot.lane.b32.xlu1 %v306_v46, %s940_s27 }
  0xb5   : > { %v284_v48 = vpop.permute.xlu1 %283 }
  0xb6   : > { %v303_v55 = vmul.f32 %v284_v48, %v1092_v47  ;;  %v360_v1 = vpop.permute.xlu0 %359 }
  0xb7   : > { %v367_v3 = vmul.f32 %v360_v1, %v1079_v39 }
  0xb8   : > { %376 = vrot.lane.b32.xlu0 %v273_v49, %s939_s26  ;;  %408 = vrot.lane.b32.xlu1 %v307_v50, %s940_s27  ;;  %s1163_s26 = scalar_lea.hbm %s1215_s3, %s772_s19 }
  0xba   : > { %v310_v54 = vpop.permute.xlu1 %309 }
  0xbb   : > { %v332_v57 = vmul.f32 %v310_v54, %v1067_v27  ;;  %v230_v9 = vpop.permute.xlu0 %229 }
  0xbc   : > { %398 = vrot.lane.b32.xlu0 %v302_v52, %s940_s27  ;;  %430 = vrot.lane.b32.xlu1 %v336_v53, %s941_s5  ;;  %v245_v21 = vmul.f32 %v230_v9, %v1050_v15 }
  0xbe   : > { %v314_v56 = vpop.permute.xlu1 %313 }
  0xbf   : > { %v333_v61 = vmul.f32 %v314_v56, %v1092_v47  ;;  %v220_v13 = vpop.permute.xlu0 %219 }
  0xc0   : > { %400 = vrot.lane.b32.xlu0 %v303_v55, %s940_s27  ;;  %v243_v54 = vmul.f32 %v220_v13, %v1092_v47 }
  0xc2   : > { %v330_v58 = vpop.permute.xlu1 %329 }
  0xc3   : > { %v337_v59 = vmul.f32 %v330_v58, %v1079_v39 }
  0xc4   : > { %422 = vrot.lane.b32.xlu0 %v332_v57, %s941_s5 }
  0xc5   : > { %432 = vrot.lane.b32.xlu1 %v337_v59, %s941_s5 }
  0xc7   : > { %v356_v62 = vpop.permute.xlu1 %355 }
  0xc8   : > { %v366_v0 = vmul.f32 %v356_v62, %v1085_v43  ;;  %424 = vrot.lane.b32.xlu0 %v333_v61, %s941_s5 }
  0xca   : > { %454 = vrot.lane.b32.xlu1 %v366_v0, %s942_s8 }
  0xcb   : > { %v344_v2 = vpop.permute.xlu1 %343 }
  0xcc   : > { %446 = vrot.lane.b32.xlu0 %v362_v63, %s942_s8  ;;  %v363_v4 = vmul.f32 %v344_v2, %v1092_v47 }
  0xce   : > { %456 = vrot.lane.b32.xlu1 %v367_v3, %s942_s8 }
  0xd0   : > { %448 = vrot.lane.b32.xlu0 %v363_v4, %s942_s8  ;;  %v225_v5 = vpop.permute.xlu1 %224 }
  0xd1   : > { %v244_v19 = vmul.f32 %v225_v5, %v1046_v11 }
  0xd4   : > { %v215_v6 = vpop.permute.xlu1 %214 }
  0xd5   : > { %v242_v45 = vmul.f32 %v215_v6, %v1067_v27 }
  0xd8   : > { %v235_v7 = vpop.permute.xlu1 %234 }
  0xd9   : > { %v246_v40 = vmul.f32 %v235_v7, %v1085_v43 }
  0xdc   : > { %v240_v8 = vpop.permute.xlu1 %239 }
  0xdd   : > { %v247_v49 = vmul.f32 %v240_v8, %v1079_v39 }
 0x104   : > { %v379_v16 = vpop.permute.xlu0 %378 }
 0x105   : > { %v467_v23 = vsel %vm464_vm1, %v244_v19, %v379_v16 }
 0x108   : > { %v381_v10 = vpop.permute.xlu1 %380  ;;  %v403_v18 = vpop.permute.xlu0 %402 }
 0x109   : > { %v468_v24 = vsel %vm464_vm1, %v245_v21, %v381_v10  ;;  %v474_v25 = vsel %vm471_vm2, %v467_v23, %v403_v18 }
 0x10c   : > { %v405_v12 = vpop.permute.xlu1 %404 }
 0x10d   : > { %v475_v28 = vsel %vm471_vm2, %v468_v24, %v405_v12 }
 0x110   : > { %v429_v14 = vpop.permute.xlu1 %428 }
 0x111   : > { %v482_v15 = vsel %vm478_vm3, %v475_v28, %v429_v14 }
 0x114   : > { %v375_v17 = vpop.permute.xlu1 %374 }
 0x115   : > { %v465_v50 = vsel %vm464_vm1, %v242_v45, %v375_v17 }
 0x11c   : > { %v453_v20 = vpop.permute.xlu1 %452 }
 0x11d   : > { %v489_v31 = vsel %vm485_vm4, %v482_v15, %v453_v20 }
 0x11e   : > { %v427_v22 = vpop.permute.xlu0 %426 }
 0x11f   : > { %v481_v11 = vsel %vm478_vm3, %v474_v25, %v427_v22 }
 0x121   : > { %v385_v26 = vpop.permute.xlu1 %384 }
 0x122   : > { %v451_v29 = vpop.permute.xlu0 %450  ;;  %v470_v55 = vsel %vm464_vm1, %v247_v49, %v385_v26 }
 0x123   : > { %v488_v30 = vsel %vm485_vm4, %v481_v11, %v451_v29 }
 0x124   : > { %756 = vmatprep.mubr.msk.f32.mxu1 %vm495_vm5, %v488_v30 }
 0x125   : > { %757 = vmatmul.mubr.msk.f32.vlgmr.msra.gmra.mrb[0].mxu1 %vm495_vm5, %v489_v31 }
 0x126   : > { %v383_v32 = vpop.permute.xlu0 %382  ;;  %v407_v33 = vpop.permute.xlu1 %406 }
 0x127   : > { %v469_v44 = vsel %vm464_vm1, %v246_v40, %v383_v32 }
 0x128   : > { %v476_v48 = vsel %vm471_vm2, %v469_v44, %v407_v33 }
 0x12a   : > { %v377_v34 = vpop.permute.xlu0 %376  ;;  %v409_v35 = vpop.permute.xlu1 %408 }
 0x12b   : > { %v477_v39 = vsel %vm471_vm2, %v470_v55, %v409_v35  ;;  %v466_v58 = vsel %vm464_vm1, %v243_v54, %v377_v34 }
 0x12e   : > { %v399_v36 = vpop.permute.xlu0 %398  ;;  %v431_v38 = vpop.permute.xlu1 %430 }
 0x12f   : > { %v483_v51 = vsel %vm478_vm3, %v476_v48, %v431_v38  ;;  %v472_v53 = vsel %vm471_vm2, %v465_v50, %v399_v36 }
 0x132   : > { %v401_v37 = vpop.permute.xlu0 %400 }
 0x133   : > { %v473_v47 = vsel %vm471_vm2, %v466_v58, %v401_v37 }
 0x136   : > { %v423_v41 = vpop.permute.xlu0 %422 }
 0x137   : > { %v433_v42 = vpop.permute.xlu1 %432  ;;  %v479_v27 = vsel %vm478_vm3, %v472_v53, %v423_v41 }
 0x138   : > { %v484_v59 = vsel %vm478_vm3, %v477_v39, %v433_v42 }
 0x13a   : > { %v425_v46 = vpop.permute.xlu0 %424 }
 0x13b   : > { %v480_v62 = vsel %vm478_vm3, %v473_v47, %v425_v46 }
 0x13c   : > { %v455_v52 = vpop.permute.xlu1 %454 }
 0x13d   : > { %v490_v43 = vsel %vm485_vm4, %v483_v51, %v455_v52 }
 0x13e   : > { %v447_v56 = vpop.permute.xlu0 %446  ;;  %759 = vmatprep.mubr.msk.f32.mxu1 %vm495_vm5, %v490_v43 }
 0x13f   : > { %v486_v57 = vsel %vm485_vm4, %v479_v27, %v447_v56 }
 0x140   : > { %v457_v60 = vpop.permute.xlu1 %456  ;;  %753 = vmatprep.mubr.msk.f32.mxu0 %vm495_vm5, %v486_v57 }
 0x141   : > { %v491_v61 = vsel %vm485_vm4, %v484_v59, %v457_v60 }
 0x142   : > { %v449_v63 = vpop.permute.xlu0 %448  ;;  %760 = vmatmul.mubr.msk.f32.gmra.mrb[2].mxu1 %vm495_vm5, %v491_v61 }
 0x143   : > { %v487_v0 = vsel %vm485_vm4, %v480_v62, %v449_v63 }
 0x144   : > { %754 = vmatmul.mubr.msk.f32.vlgmr.msra.gmra.mrb[0].mxu0 %vm495_vm5, %v487_v0 }
 0x1f8   : > { %v758_v1 = vpop.f32.mrb[0].mxu1 }
 0x1f9   : > { %616 = vst [vmem:[%s190_s11 + $0x18] sm:$0xff] %v758_v1  ;;  %v594_v2 = vpop.f32.mrb[1].mxu1 }
 0x1fa   : > { %615 = vst [vmem:[%s190_s11 + $0x10] sm:$0xff] %v594_v2 }
 0x215   : > { %v761_v3 = vpop.f32.mrb[2].mxu1 }
 0x216   : > { %618 = vst [vmem:[%s190_s11 + $0x28] sm:$0xff] %v761_v3  ;;  %v604_v4 = vpop.f32.mrb[3].mxu1 }
 0x217   : > { %617 = vst [vmem:[%s190_s11 + $0x20] sm:$0xff] %v604_v4  ;;  %v755_v5 = vpop.f32.mrb[0].mxu0 }
 0x218   : > { %614 = vst [vmem:[%s190_s11 + $0x8] sm:$0xff] %v755_v5  ;;  %v584_v6 = vpop.f32.mrb[1].mxu0 }
 0x219   : > { %613 = vst [vmem:[%s190_s11] sm:$0xff] %v584_v6 }
 0x21a   : > { %867 = shalt.err (!%p864_p5)
}
 0x21b   : > { %s868_s5 = scalar_lea.hbm %s1163_s26, 768  ;;  %s872_s8 = scalar_lea.hbm %s1215_s3, 1536 }
 0x21c   : > { %p869_p6 = scmp.ne.s32.totalorder %s1163_s26, %s868_s5  ;;  %p873_p10 = scmp.lt.u32.totalorder %s1163_s26, %s1215_s3 }
 0x21d   : > { %p874_p11 = scmp.lt.u32.totalorder %s872_s8, %s868_s5  ;;  %p876_p13 = scmp.lt.u32.totalorder %s868_s5, %s1163_s26 }
 0x21e   : > { %p870_p7 = pnand %p869_p6, %p1005_p4 }
 0x21f   : > { %p875_p12 = por %p874_p11, %p873_p10 }
 0x220   : > { %p871_p9 = pneg %p870_p7 }
 0x221   : > { %p877_p0 = por %p876_p13, %p875_p12 }
 0x223   : > { %p878_p1 = pnand %p877_p0, %p871_p9 }
 0x225   : > { %881 = shalt.err (!%p878_p1)
}
 0x226   : > { %s944_s11 = smov 128  }
 0x227   : > { %773 = dma.vmem_to_hbm [thread:$0]  (%p1005_p4), %s1158_s18, 768, %s1163_s26, %s1165_s28, %s944_s11, %s944_s11, %s940_s27  }
 0x228 PF: > { %p779_p2 = scmp.ge.s32.totalorder %s932_s17, 2  ;;  %s649_s19 = sand.u32 1, %s912_s12  }
 0x229   : > { %s650_s21 = scalar_lea.sflag [#allocation3], %s649_s19 }
 0x22a   : > { %p776_p3 = pnand %p779_p2, %p1012_p8 }
 0x22c   : > { %907 = dma.done.wait (!%p776_p3), %s650_s21, 768  }
 0x22d   : > { %909 = vsyncadd (!%p776_p3), %s650_s21, 4294966528  ;;  %s16_s17 = sadd.s32 1, %s932_s17   ;;  %s1218_s12 = smov %s916_s13 }
 0x22e   : > { %p13_p5 = scmp.ge.s32.totalorder %s16_s17, 4   ;;  %s1219_s13 = smov %s920_s14 }
 0x22f   : > { %s1220_s14 = smov %s1018_s25  ;;  %s1221_s15 = smov %s928_s16 }
 0x230   : > { %s1222_s16 = smov %s1224_s20  ;;  %15 = sbr.rel (!%p13_p5) target bundleno = 4 (0x4), region = 70 }
 0x237   :  { %655 = vsyncpa [#allocation3], 1 }
 0x238   :  { %657 = vsyncpa [#allocation3 + $0x1], 1 }

</bundles_post_ra>
